<compile_context>
chip_gen: v7x
topology: tpu7x:2x2x1
jax: 0.10.0
libtpu: 0.0.40
codegen_flags: <defaults>
</compile_context>

<pallas_src>
import jax
import jax.numpy as jnp
from jax import lax
from jax.experimental import pallas as pl
from jax.experimental.pallas import tpu as pltpu


_FLAT_MAX_ELEMS = 4096                 # flat path only for genuinely tiny planes
_TARGET_WORKSET_BYTES = 44 << 20       # double-buffered in+out+halo working set


# --------------------------------------------------------------------------- #
# Kernels
# --------------------------------------------------------------------------- #
def _make_flat_kernel(H, W):
    """Whole-plane kernel on a flattened (H*W) last dim (lane-dense for small W)."""
    HW = H * W

    def kernel(x_ref, o_ref):
        # x_ref: (1, 9, HW)  one batch element, all 9 input channels
        # o_ref: (1, 3, HW)  the 3 output channels
        k = lax.broadcasted_iota(jnp.int32, (1, HW), 1)      # flat pixel index
        col = k % W                                          # column index (in-kernel)
        has_left = col > 0
        has_right = col < (W - 1)
        has_up = k >= W
        has_down = k < (H - 1) * W

        for g in range(3):                                   # unrolled at trace time
            c0 = 3 * g
            s = (x_ref[0, c0:c0 + 1, :]
                 + x_ref[0, c0 + 1:c0 + 2, :]
                 + x_ref[0, c0 + 2:c0 + 3, :])               # (1, HW) group sum
            # horizontal central difference (zero padded): s[., j+1] - s[., j-1]
            right = jnp.where(has_right, pltpu.roll(s, shift=HW - 1, axis=1), 0.0)
            left = jnp.where(has_left, pltpu.roll(s, shift=1, axis=1), 0.0)
            xh = right - left
            acc = xh * xh
            # vertical central difference (zero padded): s[i+1, .] - s[i-1, .]
            down = jnp.where(has_down, pltpu.roll(s, shift=HW - W, axis=1), 0.0)
            up = jnp.where(has_up, pltpu.roll(s, shift=W, axis=1), 0.0)
            xv = down - up
            acc = acc + xv * xv
            o_ref[0, g:g + 1, :] = jnp.sqrt(acc + 1e-8).astype(o_ref.dtype)

    return kernel


def _make_tiled_kernel(h_true, tile_h, W, ragged, num_tiles):
    """Row-tiled kernel: block (1, 9, TH, W) plus two 8-row halo blocks.

    Fast path (all tiles when H % TH == 0, all but the last tile otherwise):
    select-free vertical diff via in-tile rolls, with rows 0 / TH-1 fixed by
    single-row updates that use the (1, W) halo rows (zeroed at the global
    image top/bottom via scalar conditions).
    Masked path (only the ragged last tile): fully masked, uses implicit
    last-block padding of the input/output.
    """

    def group_sum(ref, c0, rows=None):
        if rows is None:
            return ref[0, c0, :, :] + ref[0, c0 + 1, :, :] + ref[0, c0 + 2, :, :]
        r0, r1 = rows
        return (ref[0, c0, r0:r1, :]
                + ref[0, c0 + 1, r0:r1, :]
                + ref[0, c0 + 2, r0:r1, :])

    def kernel(x_ref, top_ref, bot_ref, o_ref):
        # x_ref:   (1, 9, TH, W)  rows [i*TH, (i+1)*TH) of one batch element
        # top_ref: (1, 9, 8, W)   halo block; local row 7 == global row i*TH - 1
        # bot_ref: (1, 9, 8, W)   halo block; local row 0 == global row (i+1)*TH
        # o_ref:   (1, 3, TH, W)
        i = pl.program_id(1)
        row0 = i * tile_h

        # Column boundary masks: built once, shared by both paths / all groups.
        col = lax.broadcasted_iota(jnp.int32, (tile_h, W), 1)
        has_left = col > 0
        has_right = col < (W - 1)

        def horiz_sq(s):
            right = jnp.where(has_right, pltpu.roll(s, shift=W - 1, axis=1), 0.0)
            left = jnp.where(has_left, pltpu.roll(s, shift=1, axis=1), 0.0)
            xh = right - left
            return xh * xh

        def fast_path():
            top_valid = row0 > 0                       # scalar: prev row exists
            bot_valid = row0 + tile_h < h_true         # scalar: next row exists
            for g in range(3):                         # unrolled at trace time
                c0 = 3 * g
                s = group_sum(x_ref, c0)                                  # (TH, W)
                xh2 = horiz_sq(s)
                # vertical diff via in-tile rolls (rows 0 / TH-1 fixed below)
                xv = (pltpu.roll(s, shift=tile_h - 1, axis=0)
                      - pltpu.roll(s, shift=1, axis=0))
                o_ref[0, g, :, :] = jnp.sqrt(xh2 + xv * xv + 1e-8).astype(o_ref.dtype)
                # seam row 0: up-neighbor is last row of the previous tile (or 0)
                s_top = jnp.where(top_valid, group_sum(top_ref, c0, (7, 8)), 0.0)
                xv0 = s[1:2, :] - s_top
                o_ref[0, g, 0:1, :] = jnp.sqrt(
                    xh2[0:1, :] + xv0 * xv0 + 1e-8).astype(o_ref.dtype)
                # seam row TH-1: down-neighbor is first row of the next tile (or 0)
                s_bot = jnp.where(bot_valid, group_sum(bot_ref, c0, (0, 1)), 0.0)
                xvl = s_bot - s[tile_h - 2:tile_h - 1, :]
                o_ref[0, g, tile_h - 1:tile_h, :] = jnp.sqrt(
                    xh2[tile_h - 1:tile_h, :] + xvl * xvl + 1e-8).astype(o_ref.dtype)

        def masked_path():
            # Ragged last tile: rows past h_true are implicit padding (garbage);
            # masks keep them out of valid rows, OOB output rows are discarded.
            local_row = lax.broadcasted_iota(jnp.int32, (tile_h, W), 0)
            grow = local_row + row0
            has_up = grow > 0
            has_down = grow < (h_true - 1)
            is_first = local_row == 0
            is_last = local_row == (tile_h - 1)
            for g in range(3):
                c0 = 3 * g
                s = group_sum(x_ref, c0)
                xh2 = horiz_sq(s)
                s_top = group_sum(top_ref, c0, (7, 8))
                s_bot = group_sum(bot_ref, c0, (0, 1))
                down = jnp.where(is_last, s_bot,
                                 pltpu.roll(s, shift=tile_h - 1, axis=0))
                up = jnp.where(is_first, s_top, pltpu.roll(s, shift=1, axis=0))
                xv = jnp.where(has_down, down, 0.0) - jnp.where(has_up, up, 0.0)
                o_ref[0, g, :, :] = jnp.sqrt(xh2 + xv * xv + 1e-8).astype(o_ref.dtype)

        if not ragged:
            fast_path()
        else:
            pl.when(i < num_tiles - 1)(fast_path)
            pl.when(i == num_tiles - 1)(masked_path)

    return kernel


# --------------------------------------------------------------------------- #
# Tile-size selection
# --------------------------------------------------------------------------- #
def _max_tile_h(W):
    """Largest TH (multiple of 8) whose double-buffered working set fits budget."""
    per_row = 96 * W          # 2 buffers x (9 in + 3 out) channels x W x 4 B
    halo = 1152 * W           # 2 buffers x 2 halo blocks x 9 ch x 8 rows x W x 4 B
    th = (_TARGET_WORKSET_BYTES - halo) // per_row
    return max(8, int(th) // 8 * 8)


def _choose_tile_h(H, W, n_batch):
    max_th = _max_tile_h(W)
    if n_batch == 1 and H >= 16:
        # Keep >= 2 row tiles so v7x's two TensorCores both get work.
        max_th = min(max_th, max(8, (H // 2) // 8 * 8))
    if max_th >= H and H % 8 == 0:
        return H                                   # single full-height tile
    max_th = min(max_th, max(8, H // 8 * 8))
    best_th, best_cost = 8, None
    for th in range(8, max_th + 1, 8):
        n_tiles = -(-H // th)
        cost = n_tiles * (th + 16)                 # input rows fetched (tile + halos)
        if best_cost is None or cost <= best_cost: # prefer bigger TH on ties
            best_th, best_cost = th, cost
    return best_th


# --------------------------------------------------------------------------- #
# Wrappers
# --------------------------------------------------------------------------- #
def _grad_map_flat(x, H, W):
    N = x.shape[0]
    HW = H * W
    x_flat = x.reshape(N, 9, HW)                 # free: row-major collapse of (H, W)
    # TODO(synk): for H < 8 with very large W the whole plane is one block;
    # tiling along W (with column halos) would be needed for such inputs.
    est_vmem = 96 * HW                           # double-buffered in + out
    vmem_limit = int(min(max(est_vmem + (8 << 20), 32 << 20), 56 << 20))
    cost = pl.CostEstimate(flops=int(14 * 3 * N * HW),
                           transcendentals=int(3 * N * HW),
                           bytes_accessed=int(12 * N * HW * 4))

    out = pl.pallas_call(
        _make_flat_kernel(H, W),
        out_shape=jax.ShapeDtypeStruct((N, 3, HW), x.dtype),
        grid_spec=pltpu.PrefetchScalarGridSpec(
            num_scalar_prefetch=0,
            grid=(N,),
            in_specs=[pl.BlockSpec((1, 9, HW), lambda n: (n, 0, 0))],
            out_specs=pl.BlockSpec((1, 3, HW), lambda n: (n, 0, 0)),
        ),
        compiler_params=pltpu.CompilerParams(
            dimension_semantics=("parallel",),
            vmem_limit_bytes=vmem_limit,
        ),
        cost_estimate=cost,
    )(x_flat)
    return out.reshape(N, 3, H, W)


def _grad_map_tiled(x, H, W, tile_h):
    N = x.shape[0]
    if tile_h is None:
        TH = _choose_tile_h(H, W, N)
    else:
        TH = int(tile_h)
        if TH >= H:
            TH = H
        elif TH % 8 != 0:
            raise ValueError("tile_h must be a multiple of 8 (or >= H).")

    num_tiles = pl.cdiv(H, TH)
    ragged = (H % TH) != 0                        # last tile handled in-kernel (no pad)
    th8 = max(TH // 8, 1)
    hb8 = pl.cdiv(H, 8)

    def x_map(n, i):
        return (n, 0, i, 0)

    def top_map(n, i):
        return (n, 0, jnp.maximum(i * th8 - 1, 0), 0)

    def bot_map(n, i):
        return (n, 0, jnp.minimum((i + 1) * th8, hb8 - 1), 0)

    # Explicit VMEM limit sized from the double-buffered working set
    # (in + out blocks + two 8-row halo blocks); safe on v7x's 64 MiB VMEM.
    est_vmem = 96 * TH * W + 1152 * W
    vmem_limit = int(min(max(est_vmem + (10 << 20), 32 << 20), 56 << 20))

    rows_fetched = num_tiles * (TH + 16)
    cost = pl.CostEstimate(
        flops=int(14 * 3 * N * H * W),
        transcendentals=int(3 * N * H * W),
        bytes_accessed=int(N * (9 * rows_fetched + 3 * H) * W * 4),
    )

    out = pl.pallas_call(
        _make_tiled_kernel(H, TH, W, ragged, num_tiles),
        out_shape=jax.ShapeDtypeStruct((N, 3, H, W), x.dtype),
        grid_spec=pltpu.PrefetchScalarGridSpec(
            num_scalar_prefetch=0,
            grid=(N, num_tiles),
            in_specs=[
                pl.BlockSpec((1, 9, TH, W), x_map),
                pl.BlockSpec((1, 9, 8, W), top_map),
                pl.BlockSpec((1, 9, 8, W), bot_map),
            ],
            out_specs=pl.BlockSpec((1, 3, TH, W), x_map),
        ),
        compiler_params=pltpu.CompilerParams(
            dimension_semantics=("parallel", "parallel"),
            vmem_limit_bytes=vmem_limit,
        ),
        cost_estimate=cost,
    )(x, x, x)
    return out


def cal_grad_map(x, *, tile_h=None):
    """Pallas TPU forward of cal_grad_map: (N, 9, H, W) f32 -> (N, 3, H, W) f32.

    tile_h: None -> auto (flattened path only for tiny planes / H < 8);
            0    -> force the flattened whole-plane path;
            k    -> force the row-tiled path with TH = k (k % 8 == 0 or k >= H).
    """
    N, C, H, W = x.shape
    if C != 9:
        raise ValueError("cal_grad_map expects 9 input channels (groups=3).")
    HW = H * W
    use_flat = (tile_h == 0) or (H < 8) or (tile_h is None and HW <= _FLAT_MAX_ELEMS)
    if use_flat:
        return _grad_map_flat(x, H, W)
    return _grad_map_tiled(x, H, W, tile_h)


# --------------------------------------------------------------------------- #
# Reference + smoke tests
# --------------------------------------------------------------------------- #
def _reference(x):
    """Pure-JAX reference of the exact PyTorch forward (verification only)."""
    N, C, H, W = x.shape
    s = x.reshape(N, 3, 3, H, W).sum(axis=2)
    sp = jnp.pad(s, ((0, 0), (0, 0), (1, 1), (1, 1)))
    x_h = sp[:, :, 1:-1, 2:] - sp[:, :, 1:-1, :-2]
    x_v = sp[:, :, 2:, 1:-1] - sp[:, :, :-2, 1:-1]
    return jnp.sqrt(x_h * x_h + x_v * x_v + 1e-8)


def _check(out, x, name):
    ref = _reference(x)
    if out.shape != ref.shape:
        raise AssertionError(f"{name}: shape {out.shape} != {ref.shape}")
    if not jnp.allclose(out, ref, atol=1e-5, rtol=1e-5):
        err = float(jnp.max(jnp.abs(out - ref)))
        raise AssertionError(f"{name}: max abs err {err}")


if __name__ == "__main__":
    key = jax.random.PRNGKey(0)
    k1, k2, k3, k4, k5 = jax.random.split(key, 5)

    # 1) Primary small case -> flattened, lane-dense path (last dim H*W = 256).
    x1 = jax.random.normal(k1, (2, 9, 16, 16), dtype=jnp.float32)
    out1 = jax.block_until_ready(cal_grad_map(x1))
    _check(out1, x1, "flat path (2,9,16,16)")

    # 2) Row-tiled fast path: 4 tiles of 8 rows, H divisible by the tile.
    x2 = jax.random.normal(k2, (1, 9, 32, 128), dtype=jnp.float32)
    out2 = jax.block_until_ready(cal_grad_map(x2, tile_h=8))
    _check(out2, x2, "tiled path (1,9,32,128) TH=8")

    # 3) Row-tiled path where H is not a multiple of the tile (ragged last tile,
    #    handled in-kernel via the masked path -- no padding / extra HBM copy).
    x3 = jax.random.normal(k3, (1, 9, 40, 128), dtype=jnp.float32)
    out3 = jax.block_until_ready(cal_grad_map(x3, tile_h=16))
    _check(out3, x3, "tiled path (1,9,40,128) TH=16 ragged")

    # 4) Auto dispatch: N=1 so TH is capped to give >= 2 parallel row tiles.
    x4 = jax.random.normal(k4, (1, 9, 48, 768), dtype=jnp.float32)
    out4 = jax.block_until_ready(cal_grad_map(x4))
    _check(out4, x4, "auto tiled path (1,9,48,768)")

    # 5) Auto dispatch that lands on a ragged tiling (fast + masked branches).
    x5 = jax.random.normal(k5, (1, 9, 40, 256), dtype=jnp.float32)
    out5 = jax.block_until_ready(cal_grad_map(x5))
    _check(out5, x5, "auto tiled path (1,9,40,256) ragged")

    print("KERNEL_OK")
</pallas_src>

<mosaic_0001>
module attributes {stable_mosaic.version = 11 : i64} {
  func.func @kernel(%arg0: i32, %arg1: memref<1x9x256xf32, #tpu.memory_space<vmem>>, %arg2: memref<1x3x256xf32, #tpu.memory_space<vmem>>) attributes {dimension_semantics = [#tpu.dimension_semantics<parallel>], iteration_bounds = array<i64: 2>, scalar_prefetch = 0 : i64, scratch_operands = 0 : i64, tpu.core_type = #tpu.core_type<tc>, window_params = [{transform_indices = @transform_0, window_bounds = array<i64: 1, 9, 256>}, {transform_indices = @transform_1, window_bounds = array<i64: 1, 3, 256>}]} {
    %0 = tpu.iota {dimensions = array<i32: 1>} : vector<1x256xi32>
    %c16_i32 = arith.constant 16 : i32
    %c0_i32 = arith.constant 0 : i32
    %1 = arith.cmpi eq, %c16_i32, %c0_i32 : i32
    %c1_i32 = arith.constant 1 : i32
    %2 = arith.select %1, %c1_i32, %c16_i32 : i32
    %3 = vector.broadcast %2 : i32 to vector<1x256xi32>
    %4 = arith.remsi %0, %3 : vector<1x256xi32>
    %c0_i32_0 = arith.constant 0 : i32
    %5 = vector.broadcast %c0_i32_0 : i32 to vector<1x256xi32>
    %6 = arith.cmpi ne, %4, %5 : vector<1x256xi32>
    %c0_i32_1 = arith.constant 0 : i32
    %7 = vector.broadcast %c0_i32_1 : i32 to vector<1x256xi32>
    %8 = arith.cmpi slt, %4, %7 : vector<1x256xi32>
    %c0_i32_2 = arith.constant 0 : i32
    %9 = arith.cmpi slt, %2, %c0_i32_2 : i32
    %10 = vector.broadcast %9 : i1 to vector<1x256xi1>
    %11 = vector.broadcast %10 : vector<1x256xi1> to vector<1x256xi1>
    %12 = arith.xori %8, %11 : vector<1x256xi1>
    %13 = arith.andi %12, %6 : vector<1x256xi1>
    %14 = vector.broadcast %2 : i32 to vector<1x256xi32>
    %15 = arith.addi %4, %14 : vector<1x256xi32>
    %16 = arith.select %13, %15, %4 : vector<1x256xi1>, vector<1x256xi32>
    %c0_i32_3 = arith.constant 0 : i32
    %17 = vector.broadcast %c0_i32_3 : i32 to vector<1x256xi32>
    %18 = arith.cmpi sgt, %16, %17 : vector<1x256xi32>
    %c15_i32 = arith.constant 15 : i32
    %19 = vector.broadcast %c15_i32 : i32 to vector<1x256xi32>
    %20 = arith.cmpi slt, %16, %19 : vector<1x256xi32>
    %c16_i32_4 = arith.constant 16 : i32
    %21 = vector.broadcast %c16_i32_4 : i32 to vector<1x256xi32>
    %22 = arith.cmpi sge, %0, %21 : vector<1x256xi32>
    %c240_i32 = arith.constant 240 : i32
    %23 = vector.broadcast %c240_i32 : i32 to vector<1x256xi32>
    %24 = arith.cmpi slt, %0, %23 : vector<1x256xi32>
    %c0 = arith.constant 0 : index
    %c0_5 = arith.constant 0 : index
    %c0_6 = arith.constant 0 : index
    %25 = vector.load %arg1[%c0, %c0_5, %c0_6] : memref<1x9x256xf32, #tpu.memory_space<vmem>>, vector<1x1x256xf32>
    %26 = vector.shape_cast %25 : vector<1x1x256xf32> to vector<1x256xf32>
    %c0_7 = arith.constant 0 : index
    %c1 = arith.constant 1 : index
    %c0_8 = arith.constant 0 : index
    %27 = vector.load %arg1[%c0_7, %c1, %c0_8] : memref<1x9x256xf32, #tpu.memory_space<vmem>>, vector<1x1x256xf32>
    %28 = vector.shape_cast %27 : vector<1x1x256xf32> to vector<1x256xf32>
    %29 = arith.addf %26, %28 : vector<1x256xf32>
    %c0_9 = arith.constant 0 : index
    %c2 = arith.constant 2 : index
    %c0_10 = arith.constant 0 : index
    %30 = vector.load %arg1[%c0_9, %c2, %c0_10] : memref<1x9x256xf32, #tpu.memory_space<vmem>>, vector<1x1x256xf32>
    %31 = vector.shape_cast %30 : vector<1x1x256xf32> to vector<1x256xf32>
    %32 = arith.addf %29, %31 : vector<1x256xf32>
    %c255_i32 = arith.constant 255 : i32
    %33 = tpu.dynamic_rotate %32 by %c255_i32 dim 1 : vector<1x256xf32>, i32 -> vector<1x256xf32>
    %cst = arith.constant 0.000000e+00 : f32
    %34 = vector.broadcast %cst : f32 to vector<1x256xf32>
    %35 = arith.select %20, %33, %34 : vector<1x256xi1>, vector<1x256xf32>
    %c1_i32_11 = arith.constant 1 : i32
    %36 = tpu.dynamic_rotate %32 by %c1_i32_11 dim 1 : vector<1x256xf32>, i32 -> vector<1x256xf32>
    %cst_12 = arith.constant 0.000000e+00 : f32
    %37 = vector.broadcast %cst_12 : f32 to vector<1x256xf32>
    %38 = arith.select %18, %36, %37 : vector<1x256xi1>, vector<1x256xf32>
    %39 = arith.subf %35, %38 : vector<1x256xf32>
    %40 = arith.mulf %39, %39 : vector<1x256xf32>
    %c240_i32_13 = arith.constant 240 : i32
    %41 = tpu.dynamic_rotate %32 by %c240_i32_13 dim 1 : vector<1x256xf32>, i32 -> vector<1x256xf32>
    %cst_14 = arith.constant 0.000000e+00 : f32
    %42 = vector.broadcast %cst_14 : f32 to vector<1x256xf32>
    %43 = arith.select %24, %41, %42 : vector<1x256xi1>, vector<1x256xf32>
    %c16_i32_15 = arith.constant 16 : i32
    %44 = tpu.dynamic_rotate %32 by %c16_i32_15 dim 1 : vector<1x256xf32>, i32 -> vector<1x256xf32>
    %cst_16 = arith.constant 0.000000e+00 : f32
    %45 = vector.broadcast %cst_16 : f32 to vector<1x256xf32>
    %46 = arith.select %22, %44, %45 : vector<1x256xi1>, vector<1x256xf32>
    %47 = arith.subf %43, %46 : vector<1x256xf32>
    %48 = arith.mulf %47, %47 : vector<1x256xf32>
    %49 = arith.addf %40, %48 : vector<1x256xf32>
    %cst_17 = arith.constant 9.99999993E-9 : f32
    %50 = vector.broadcast %cst_17 : f32 to vector<1x256xf32>
    %51 = arith.addf %49, %50 : vector<1x256xf32>
    %52 = math.sqrt %51 : vector<1x256xf32>
    %c0_18 = arith.constant 0 : index
    %c0_19 = arith.constant 0 : index
    %c0_20 = arith.constant 0 : index
    %53 = vector.load %arg2[%c0_18, %c0_19, %c0_20] : memref<1x3x256xf32, #tpu.memory_space<vmem>>, vector<1x1x256xf32>
    %54 = vector.shape_cast %53 : vector<1x1x256xf32> to vector<1x256xf32>
    %55 = vector.shape_cast %52 : vector<1x256xf32> to vector<1x1x256xf32>
    tpu.vector_store %arg2[%c0_18, %c0_19, %c0_20], %55 {strides = array<i32>} : memref<1x3x256xf32, #tpu.memory_space<vmem>>, vector<1x1x256xf32>,
    %c0_21 = arith.constant 0 : index
    %c3 = arith.constant 3 : index
    %c0_22 = arith.constant 0 : index
    %56 = vector.load %arg1[%c0_21, %c3, %c0_22] : memref<1x9x256xf32, #tpu.memory_space<vmem>>, vector<1x1x256xf32>
    %57 = vector.shape_cast %56 : vector<1x1x256xf32> to vector<1x256xf32>
    %c0_23 = arith.constant 0 : index
    %c4 = arith.constant 4 : index
    %c0_24 = arith.constant 0 : index
    %58 = vector.load %arg1[%c0_23, %c4, %c0_24] : memref<1x9x256xf32, #tpu.memory_space<vmem>>, vector<1x1x256xf32>
    %59 = vector.shape_cast %58 : vector<1x1x256xf32> to vector<1x256xf32>
    %60 = arith.addf %57, %59 : vector<1x256xf32>
    %c0_25 = arith.constant 0 : index
    %c5 = arith.constant 5 : index
    %c0_26 = arith.constant 0 : index
    %61 = vector.load %arg1[%c0_25, %c5, %c0_26] : memref<1x9x256xf32, #tpu.memory_space<vmem>>, vector<1x1x256xf32>
    %62 = vector.shape_cast %61 : vector<1x1x256xf32> to vector<1x256xf32>
    %63 = arith.addf %60, %62 : vector<1x256xf32>
    %c255_i32_27 = arith.constant 255 : i32
    %64 = tpu.dynamic_rotate %63 by %c255_i32_27 dim 1 : vector<1x256xf32>, i32 -> vector<1x256xf32>
    %cst_28 = arith.constant 0.000000e+00 : f32
    %65 = vector.broadcast %cst_28 : f32 to vector<1x256xf32>
    %66 = arith.select %20, %64, %65 : vector<1x256xi1>, vector<1x256xf32>
    %c1_i32_29 = arith.constant 1 : i32
    %67 = tpu.dynamic_rotate %63 by %c1_i32_29 dim 1 : vector<1x256xf32>, i32 -> vector<1x256xf32>
    %cst_30 = arith.constant 0.000000e+00 : f32
    %68 = vector.broadcast %cst_30 : f32 to vector<1x256xf32>
    %69 = arith.select %18, %67, %68 : vector<1x256xi1>, vector<1x256xf32>
    %70 = arith.subf %66, %69 : vector<1x256xf32>
    %71 = arith.mulf %70, %70 : vector<1x256xf32>
    %c240_i32_31 = arith.constant 240 : i32
    %72 = tpu.dynamic_rotate %63 by %c240_i32_31 dim 1 : vector<1x256xf32>, i32 -> vector<1x256xf32>
    %cst_32 = arith.constant 0.000000e+00 : f32
    %73 = vector.broadcast %cst_32 : f32 to vector<1x256xf32>
    %74 = arith.select %24, %72, %73 : vector<1x256xi1>, vector<1x256xf32>
    %c16_i32_33 = arith.constant 16 : i32
    %75 = tpu.dynamic_rotate %63 by %c16_i32_33 dim 1 : vector<1x256xf32>, i32 -> vector<1x256xf32>
    %cst_34 = arith.constant 0.000000e+00 : f32
    %76 = vector.broadcast %cst_34 : f32 to vector<1x256xf32>
    %77 = arith.select %22, %75, %76 : vector<1x256xi1>, vector<1x256xf32>
    %78 = arith.subf %74, %77 : vector<1x256xf32>
    %79 = arith.mulf %78, %78 : vector<1x256xf32>
    %80 = arith.addf %71, %79 : vector<1x256xf32>
    %cst_35 = arith.constant 9.99999993E-9 : f32
    %81 = vector.broadcast %cst_35 : f32 to vector<1x256xf32>
    %82 = arith.addf %80, %81 : vector<1x256xf32>
    %83 = math.sqrt %82 : vector<1x256xf32>
    %c0_36 = arith.constant 0 : index
    %c1_37 = arith.constant 1 : index
    %c0_38 = arith.constant 0 : index
    %84 = vector.load %arg2[%c0_36, %c1_37, %c0_38] : memref<1x3x256xf32, #tpu.memory_space<vmem>>, vector<1x1x256xf32>
    %85 = vector.shape_cast %84 : vector<1x1x256xf32> to vector<1x256xf32>
    %86 = vector.shape_cast %83 : vector<1x256xf32> to vector<1x1x256xf32>
    tpu.vector_store %arg2[%c0_36, %c1_37, %c0_38], %86 {strides = array<i32>} : memref<1x3x256xf32, #tpu.memory_space<vmem>>, vector<1x1x256xf32>,
    %c0_39 = arith.constant 0 : index
    %c6 = arith.constant 6 : index
    %c0_40 = arith.constant 0 : index
    %87 = vector.load %arg1[%c0_39, %c6, %c0_40] : memref<1x9x256xf32, #tpu.memory_space<vmem>>, vector<1x1x256xf32>
    %88 = vector.shape_cast %87 : vector<1x1x256xf32> to vector<1x256xf32>
    %c0_41 = arith.constant 0 : index
    %c7 = arith.constant 7 : index
    %c0_42 = arith.constant 0 : index
    %89 = vector.load %arg1[%c0_41, %c7, %c0_42] : memref<1x9x256xf32, #tpu.memory_space<vmem>>, vector<1x1x256xf32>
    %90 = vector.shape_cast %89 : vector<1x1x256xf32> to vector<1x256xf32>
    %91 = arith.addf %88, %90 : vector<1x256xf32>
    %c0_43 = arith.constant 0 : index
    %c8 = arith.constant 8 : index
    %c0_44 = arith.constant 0 : index
    %92 = vector.load %arg1[%c0_43, %c8, %c0_44] : memref<1x9x256xf32, #tpu.memory_space<vmem>>, vector<1x1x256xf32>
    %93 = vector.shape_cast %92 : vector<1x1x256xf32> to vector<1x256xf32>
    %94 = arith.addf %91, %93 : vector<1x256xf32>
    %c255_i32_45 = arith.constant 255 : i32
    %95 = tpu.dynamic_rotate %94 by %c255_i32_45 dim 1 : vector<1x256xf32>, i32 -> vector<1x256xf32>
    %cst_46 = arith.constant 0.000000e+00 : f32
    %96 = vector.broadcast %cst_46 : f32 to vector<1x256xf32>
    %97 = arith.select %20, %95, %96 : vector<1x256xi1>, vector<1x256xf32>
    %c1_i32_47 = arith.constant 1 : i32
    %98 = tpu.dynamic_rotate %94 by %c1_i32_47 dim 1 : vector<1x256xf32>, i32 -> vector<1x256xf32>
    %cst_48 = arith.constant 0.000000e+00 : f32
    %99 = vector.broadcast %cst_48 : f32 to vector<1x256xf32>
    %100 = arith.select %18, %98, %99 : vector<1x256xi1>, vector<1x256xf32>
    %101 = arith.subf %97, %100 : vector<1x256xf32>
    %102 = arith.mulf %101, %101 : vector<1x256xf32>
    %c240_i32_49 = arith.constant 240 : i32
    %103 = tpu.dynamic_rotate %94 by %c240_i32_49 dim 1 : vector<1x256xf32>, i32 -> vector<1x256xf32>
    %cst_50 = arith.constant 0.000000e+00 : f32
    %104 = vector.broadcast %cst_50 : f32 to vector<1x256xf32>
    %105 = arith.select %24, %103, %104 : vector<1x256xi1>, vector<1x256xf32>
    %c16_i32_51 = arith.constant 16 : i32
    %106 = tpu.dynamic_rotate %94 by %c16_i32_51 dim 1 : vector<1x256xf32>, i32 -> vector<1x256xf32>
    %cst_52 = arith.constant 0.000000e+00 : f32
    %107 = vector.broadcast %cst_52 : f32 to vector<1x256xf32>
    %108 = arith.select %22, %106, %107 : vector<1x256xi1>, vector<1x256xf32>
    %109 = arith.subf %105, %108 : vector<1x256xf32>
    %110 = arith.mulf %109, %109 : vector<1x256xf32>
    %111 = arith.addf %102, %110 : vector<1x256xf32>
    %cst_53 = arith.constant 9.99999993E-9 : f32
    %112 = vector.broadcast %cst_53 : f32 to vector<1x256xf32>
    %113 = arith.addf %111, %112 : vector<1x256xf32>
    %114 = math.sqrt %113 : vector<1x256xf32>
    %c0_54 = arith.constant 0 : index
    %c2_55 = arith.constant 2 : index
    %c0_56 = arith.constant 0 : index
    %115 = vector.load %arg2[%c0_54, %c2_55, %c0_56] : memref<1x3x256xf32, #tpu.memory_space<vmem>>, vector<1x1x256xf32>
    %116 = vector.shape_cast %115 : vector<1x1x256xf32> to vector<1x256xf32>
    %117 = vector.shape_cast %114 : vector<1x256xf32> to vector<1x1x256xf32>
    tpu.vector_store %arg2[%c0_54, %c2_55, %c0_56], %117 {strides = array<i32>} : memref<1x3x256xf32, #tpu.memory_space<vmem>>, vector<1x1x256xf32>,
    return
  }
  func.func @transform_0(%arg0: i32) -> (i32, i32, i32) {
    %c0_i32 = arith.constant 0 : i32
    %c0_i32_0 = arith.constant 0 : i32
    %c0_i32_1 = arith.constant 0 : i32
    return %arg0, %c0_i32, %c0_i32_0 : i32, i32, i32
  }
  func.func @transform_1(%arg0: i32) -> (i32, i32, i32) {
    %c0_i32 = arith.constant 0 : i32
    %c0_i32_0 = arith.constant 0 : i32
    %c0_i32_1 = arith.constant 0 : i32
    return %arg0, %c0_i32, %c0_i32_0 : i32, i32, i32
  }
}

</mosaic_0001>

<bundles_post_ra>
// kernel: tpu_custom_call.1
= control target key start
LH: loop header
LB: loop body
LE: loop exit
PB: predicated region body
PF: predicated region fallthrough
CT: control target
= control target key end

     0   :  { %s575_s6 = smov 0   ;;  %s763_s0 = inlined_call_operand.vmem [shape: f32[2,9,256], index: 0, kind: input, shape index: {}]   ;;  %s764_s1 = inlined_call_operand.vmem [shape: f32[2,3,256], index: 1, kind: output, shape index: {}]  }
   0x1 LB: > { %s504_s7 = sadd.s32 4294967295, %s558_s6   ;;  %p508_p0 = scmp.ge.s32.totalorder %s558_s6, 1  ;;  %s558_s6 = sphi %s575_s6, %s11_s6  }
   0x2   : > { %p87_p1 = scmp.lt.s32.totalorder %s558_s6, 3 }
   0x4   : > { %p88_p2 = pnand %p508_p0, %p87_p1 }
   0x5   : > { %p107_p3 = scmp.lt.s32.totalorder (!%p88_p2), %s504_s7, 1  ;;  %v117_v0 = vlaneseq (!%p88_p2)  ;;  %s560_s12 = smov (!%p88_p2), 1  }
   0x6   : > { %91 = sbr.rel (%p88_p2) target bundleno = 215 (0xd7), region = 24  ;;  %s561_s13 = smov (!%p88_p2), 127  }
   0x7   : > { %v586_v1 = vshrl.u32 (!%p88_p2), %v117_v0, 7  ;;  %s562_s14 = smov (!%p88_p2), 112   ;;  %s563_s15 = smov (!%p88_p2), 16   ;;  %v618_v25 = vand.u32 (!%p88_p2), 127, %v117_v0  ;;  %vm720_vm14 = vcmp.lt.s32.totalorder (!%p88_p2), %v117_v0, 256 }
   0x9   : > { %v162_v6 = vsub.s32 (!%p88_p2), 0, %v586_v1  ;;  %v166_v8 = vsub.s32 (!%p88_p2), 1, %v586_v1  ;;  %v621_v26 = vadd.s32 (!%p88_p2), 128, %v618_v25  ;;  %v124_v29 = vand.u32 (!%p88_p2), 15, %v618_v25 }
   0xa   : > { %vm183_vm0 = vcmp.lt.s32.totalorder (!%p88_p2), %v618_v25, 1  ;;  %vm174_vm1 = vcmp.lt.s32.totalorder (!%p88_p2), %v618_v25, 127  ;;  %vm196_vm6 = vcmp.lt.s32.totalorder (!%p88_p2), %v618_v25, 112  ;;  %vm205_vm8 = vcmp.lt.s32.totalorder (!%p88_p2), %v618_v25, 16 }
   0xb   : > { %v131_v30 = vand.u32 (!%p88_p2), 15, %v621_v26  ;;  %vm627_vm2 = vcmp.gt.s32.totalorder (!%p88_p2), %v124_v29, 0  ;;  %vm645_vm5 = vcmp.lt.s32.totalorder (!%p88_p2), %v124_v29, 15  ;;  %vm151_vm7 = vcmp.lt.s32.totalorder (!%p88_p2), %v621_v26, 240 }
   0xc   : > { %vm148_vm9 = vcmp.ge.s32.totalorder (!%p88_p2), %v618_v25, 16 }
   0xd   : > { %s776_s7 = smov (!%p107_p3, %s504_s7), 1  ;;  %vm631_vm3 = vcmp.gt.s32.totalorder %v131_v30, 0  ;;  %vm637_vm4 = vcmp.lt.s32.totalorder %v131_v30, 15 }
   0xe   : > { %s525_s8 = sshll.u32 %s776_s7, 5  ;;  %s526_s16 = sshll.u32 %s776_s7, 3 }
   0xf   : > { %s592_s11 = scalar_lea.vmem %s763_s0, %s525_s8  ;;  %s717_s19 = scalar_lea.vmem %s764_s1, %s526_s16 }
  0x10   : > { %v152_v2 = vld [vmem:[%s592_s11] ss:$8 sm:$0x3]  ;;  %v513_v3 = vld [vmem:[%s592_s11 + $0x1] ss:$8 sm:$0x3] }
  0x11   : > { %v155_v4 = vadd.f32 %v513_v3, %v152_v2  ;;  %v514_v5 = vld [vmem:[%s592_s11 + $0x2] ss:$8 sm:$0x3]  ;;  %v515_v11 = vld [vmem:[%s592_s11 + $0x3] ss:$8 sm:$0x3] }
  0x12   : > { %v516_v12 = vld [vmem:[%s592_s11 + $0x4] ss:$8 sm:$0x3]  ;;  %v517_v14 = vld [vmem:[%s592_s11 + $0x5] ss:$8 sm:$0x3] }
  0x13   : > { %v158_v7 = vadd.f32 %v514_v5, %v155_v4  ;;  %v259_v13 = vadd.f32 %v516_v12, %v515_v11  ;;  %v519_v18 = vld [vmem:[%s592_s11 + $0x6] ss:$8 sm:$0x3]  ;;  %v520_v19 = vld [vmem:[%s592_s11 + $0x7] ss:$8 sm:$0x3] }
  0x14   : > { %v356_v20 = vadd.f32 %v520_v19, %v519_v18  ;;  %v521_v21 = vld [vmem:[%s592_s11 + $0x10] ss:$8 sm:$0x3]  ;;  %v564_v11 = vmov 1966171168  }
  0x15   : > { %v163_v9 = vrot.slane %v158_v7, %v162_v6  ;;  %v167_v10 = vrot.slane %v158_v7, %v166_v8  ;;  %v262_v15 = vadd.f32 %v517_v14, %v259_v13  ;;  %v236_v12 = vunpack.c.l.s4 %v564_v11 }
  0x16   : > { %v359_v22 = vadd.f32 %v521_v21, %v356_v20 }
  0x17   : > { %179 = vrot.lane.b32.xlu1 %v163_v9, %s560_s12  ;;  %170 = vrot.lane.b32.xlu0 %v163_v9, %s561_s13  ;;  %v271_v16 = vrot.slane %v262_v15, %v166_v8  ;;  %v267_v17 = vrot.slane %v262_v15, %v162_v6  ;;  %v237_v21 = vunpack.c.0.s8 %v236_v12 }
  0x18   : > { %v368_v23 = vrot.slane %v359_v22, %v166_v8  ;;  %v364_v24 = vrot.slane %v359_v22, %v162_v6 }
  0x1b   : > { %181 = vrot.lane.b32.xlu1 %v167_v10, %s560_s12  ;;  %172 = vrot.lane.b32.xlu0 %v167_v10, %s561_s13 }
  0x1f   : > { %194 = vrot.lane.b32.xlu1 %v167_v10, %s562_s14  ;;  %192 = vrot.lane.b32.xlu0 %v163_v9, %s562_s14 }
  0x23   : > { %203 = vrot.lane.b32.xlu1 %v167_v10, %s563_s15  ;;  %201 = vrot.lane.b32.xlu0 %v163_v9, %s563_s15 }
  0x27   : > { %276 = vrot.lane.b32.xlu1 %v271_v16, %s561_s13  ;;  %274 = vrot.lane.b32.xlu0 %v267_v17, %s561_s13 }
  0x2b   : > { %284 = vrot.lane.b32.xlu1 %v271_v16, %s560_s12  ;;  %282 = vrot.lane.b32.xlu0 %v267_v17, %s560_s12 }
  0x2f   : > { %296 = vrot.lane.b32.xlu1 %v271_v16, %s562_s14  ;;  %294 = vrot.lane.b32.xlu0 %v267_v17, %s562_s14 }
  0x33   : > { %304 = vrot.lane.b32.xlu1 %v271_v16, %s563_s15  ;;  %302 = vrot.lane.b32.xlu0 %v267_v17, %s563_s15 }
  0x37   : > { %373 = vrot.lane.b32.xlu1 %v368_v23, %s561_s13  ;;  %371 = vrot.lane.b32.xlu0 %v364_v24, %s561_s13 }
  0x3b   : > { %381 = vrot.lane.b32.xlu1 %v368_v23, %s560_s12  ;;  %379 = vrot.lane.b32.xlu0 %v364_v24, %s560_s12 }
  0x3f   : > { %393 = vrot.lane.b32.xlu1 %v368_v23, %s562_s14  ;;  %391 = vrot.lane.b32.xlu0 %v364_v24, %s562_s14 }
  0x43   : > { %401 = vrot.lane.b32.xlu1 %v368_v23, %s563_s15  ;;  %399 = vrot.lane.b32.xlu0 %v364_v24, %s563_s15 }
  0x89   : > { %v180_v27 = vpop.permute.xlu1 %179  ;;  %v171_v28 = vpop.permute.xlu0 %170 }
  0x8d   : > { %v182_v31 = vpop.permute.xlu1 %181  ;;  %v173_v32 = vpop.permute.xlu0 %172 }
  0x8e   : > { %v184_v35 = vsel %vm183_vm0, %v180_v27, %v182_v31  ;;  %v176_v37 = vsel %vm174_vm1, %v173_v32, %v171_v28  ;;  %v185_v38 = vsel %vm183_vm0, %v182_v31, %v180_v27  ;;  %v175_v40 = vsel %vm174_vm1, %v171_v28, %v173_v32 }
  0x8f   : > { %v187_v43 = vsel %vm631_vm3, %v184_v35, 0.0  ;;  %v178_v44 = vsel %vm637_vm4, %v176_v37, 0.0  ;;  %v186_v45 = vsel %vm627_vm2, %v185_v38, 0.0  ;;  %v177_v46 = vsel %vm645_vm5, %v175_v40, 0.0 }
  0x90   : > { %v189_v48 = vsub.f32 %v178_v44, %v187_v43  ;;  %v188_v51 = vsub.f32 %v177_v46, %v186_v45 }
  0x91   : > { %v195_v41 = vpop.permute.xlu1 %194  ;;  %v193_v42 = vpop.permute.xlu0 %192 }
  0x92   : > { %v198_v47 = vsel %vm196_vm6, %v195_v41, %v193_v42  ;;  %v197_v55 = vsel %vm196_vm6, %v193_v42, %v195_v41  ;;  %v191_v59 = vmul.f32 %v189_v48, %v189_v48  ;;  %v190_v63 = vmul.f32 %v188_v51, %v188_v51 }
  0x93   : > { %v200_v52 = vsel %vm151_vm7, %v198_v47, 0.0  ;;  %v704_v41 = vsub.s32 %v237_v21, %v586_v1 }
  0x95   : > { %v204_v49 = vpop.permute.xlu1 %203  ;;  %v202_v50 = vpop.permute.xlu0 %201 }
  0x96   : > { %v206_v53 = vsel %vm205_vm8, %v202_v50, %v204_v49  ;;  %v207_v54 = vsel %vm205_vm8, %v204_v49, %v202_v50 }
  0x97   : > { %v208_v56 = vsel %vm148_vm9, %v207_v54, 0.0  ;;  %v211_v57 = vsub.f32 %v200_v52, %v206_v53 }
  0x98   : > { %v210_v58 = vsub.f32 %v197_v55, %v208_v56 }
  0x99   : > { %v213_v60 = vmul.f32 %v211_v57, %v211_v57  ;;  %v277_v61 = vpop.permute.xlu1 %276  ;;  %v275_v62 = vpop.permute.xlu0 %274 }
  0x9a   : > { %v212_v2 = vmul.f32 %v210_v58, %v210_v58  ;;  %v279_v13 = vsel %vm174_vm1, %v277_v61, %v275_v62  ;;  %v278_v16 = vsel %vm174_vm1, %v275_v62, %v277_v61 }
  0x9b   : > { %v215_v3 = vadd.f32 %v213_v60, %v191_v59  ;;  %v281_v20 = vsel %vm637_vm4, %v279_v13, 0.0  ;;  %v280_v22 = vsel %vm645_vm5, %v278_v16, 0.0 }
  0x9c   : > { %v214_v4 = vadd.f32 %v212_v2, %v190_v63 }
  0x9d   : > { %v217_v5 = vadd.f32 1e-08, %v215_v3  ;;  %v285_v6 = vpop.permute.xlu1 %284  ;;  %v283_v7 = vpop.permute.xlu0 %282 }
  0x9e   : > { %v216_v8 = vadd.f32 1e-08, %v214_v4  ;;  %v286_v9 = vsel %vm183_vm0, %v283_v7, %v285_v6  ;;  %v287_v10 = vsel %vm183_vm0, %v285_v6, %v283_v7 }
  0x9f   : > { %540 = vrsqrt.f32 %v217_v5  ;;  %v289_v17 = vsel %vm631_vm3, %v286_v9, 0.0  ;;  %v288_v18 = vsel %vm627_vm2, %v287_v10, 0.0  ;;  %vm227_vm10 = vcmp.eq.f32.partialorder %v217_v5, inf }
  0xa0   : > { %542 = vrsqrt.f32 %v216_v8  ;;  %v291_v23 = vsub.f32 %v281_v20, %v289_v17  ;;  %v290_v28 = vsub.f32 %v280_v22, %v288_v18  ;;  %vm229_vm11 = vcmp.eq.f32.partialorder %v217_v5, 0.0 }
  0xa1   : > { %v297_v14 = vpop.permute.xlu1 %296  ;;  %v295_v15 = vpop.permute.xlu0 %294  ;;  %v230_v51 = vand.u32 2147483648, %v217_v5  ;;  %vm220_vm12 = vcmp.eq.f32.partialorder %v216_v8, inf  ;;  %v223_v53 = vand.u32 2147483648, %v216_v8  ;;  %vm222_vm13 = vcmp.eq.f32.partialorder %v216_v8, 0.0 }
  0xa2   : > { %v299_v19 = vsel %vm196_vm6, %v297_v14, %v295_v15  ;;  %v298_v32 = vsel %vm196_vm6, %v295_v15, %v297_v14  ;;  %v293_v42 = vmul.f32 %v291_v23, %v291_v23  ;;  %v292_v48 = vmul.f32 %v290_v28, %v290_v28 }
  0xa3   : > { %v301_v29 = vsel %vm151_vm7, %v299_v19, 0.0 }
  0xa5   : > { %v305_v24 = vpop.permute.xlu1 %304  ;;  %v303_v27 = vpop.permute.xlu0 %302 }
  0xa6   : > { %v306_v30 = vsel %vm205_vm8, %v303_v27, %v305_v24  ;;  %v307_v31 = vsel %vm205_vm8, %v305_v24, %v303_v27 }
  0xa7   : > { %v308_v35 = vsel %vm148_vm9, %v307_v31, 0.0  ;;  %v311_v37 = vsub.f32 %v301_v29, %v306_v30 }
  0xa8   : > { %v310_v38 = vsub.f32 %v298_v32, %v308_v35 }
  0xa9   : > { %v541_v40 = vpop.eup %540  ;;  %v313_v43 = vmul.f32 %v311_v37, %v311_v37  ;;  %v374_v44 = vpop.permute.xlu1 %373 }
  0xaa   : > { %v372_v45 = vpop.permute.xlu0 %371  ;;  %v543_v46 = vpop.eup %542  ;;  %v226_v47 = vmul.f32 %v541_v40, %v217_v5  ;;  %v312_v49 = vmul.f32 %v310_v38, %v310_v38 }
  0xab   : > { %v219_v50 = vmul.f32 %v543_v46, %v216_v8  ;;  %v315_v52 = vadd.f32 %v313_v43, %v293_v42  ;;  %v376_v4 = vsel %vm174_vm1, %v374_v44, %v372_v45 }
  0xac   : > { %v228_v54 = vsel %vm227_vm10, %v217_v5, %v226_v47  ;;  %v314_v55 = vadd.f32 %v312_v49, %v292_v48  ;;  %v378_v0 = vsel %vm637_vm4, %v376_v4, 0.0 }
  0xad   : > { %v221_v1 = vsel %vm220_vm12, %v216_v8, %v219_v50  ;;  %v231_v56 = vsel %vm229_vm11, %v230_v51, %v228_v54  ;;  %v317_v57 = vadd.f32 1e-08, %v315_v52  ;;  %v382_v58 = vpop.permute.xlu1 %381  ;;  %v375_v8 = vsel %vm174_vm1, %v372_v45, %v374_v44 }
  0xae   : > { %v380_v59 = vpop.permute.xlu0 %379  ;;  %v224_v60 = vsel %vm222_vm13, %v223_v53, %v221_v1  ;;  %v316_v61 = vadd.f32 1e-08, %v314_v55  ;;  %v377_v13 = vsel %vm645_vm5, %v375_v8, 0.0 }
  0xaf   : > { %v234_v62 = vcombine.low %v224_v60, %v231_v56  ;;  %544 = vrsqrt.f32 %v317_v57  ;;  %v383_v63 = vsel %vm183_vm0, %v380_v59, %v382_v58  ;;  %v384_v2 = vsel %vm183_vm0, %v382_v58, %v380_v59 }
  0xb0   : > { %546 = vrsqrt.f32 %v316_v61  ;;  %v386_v9 = vsel %vm631_vm3, %v383_v63, 0.0  ;;  %v385_v11 = vsel %vm627_vm2, %v384_v2, 0.0  ;;  %vm327_vm15 = vcmp.eq.f32.partialorder %v317_v57, inf }
  0xb1   : > { %v241_v3 = vrot.slane %v234_v62, %v704_v41  ;;  %v394_v5 = vpop.permute.xlu1 %393  ;;  %v388_v14 = vsub.f32 %v378_v0, %v386_v9  ;;  %v387_v16 = vsub.f32 %v377_v13, %v385_v11  ;;  %vm329_vm0 = vcmp.eq.f32.partialorder %v317_v57, 0.0 }
  0xb2   : > { %v392_v6 = vpop.permute.xlu0 %391  ;;  %v330_v30 = vand.u32 2147483648, %v317_v57  ;;  %vm320_vm1 = vcmp.eq.f32.partialorder %v316_v61, inf  ;;  %v323_v32 = vand.u32 2147483648, %v316_v61  ;;  %vm322_vm2 = vcmp.eq.f32.partialorder %v316_v61, 0.0 }
  0xb3   : > { %v248_v10 = vrot.slane %v241_v3, %v704_v41  ;;  %v396_v12 = vsel %vm196_vm6, %v394_v5, %v392_v6  ;;  %v395_v18 = vsel %vm196_vm6, %v392_v6, %v394_v5  ;;  %v390_v22 = vmul.f32 %v388_v14, %v388_v14 }
  0xb4   : > { %v398_v33 = vsel %vm151_vm7, %v396_v12, 0.0  ;;  %v389_v27 = vmul.f32 %v387_v16, %v387_v16 }
  0xb5   : > { %254 = vst.msk [vmem:[%s717_s19] ss:$4 sm:$0x3] %vm720_vm14, %v248_v10  ;;  %v402_v34 = vpop.permute.xlu1 %401 }
  0xb6   : > { %v400_v15 = vpop.permute.xlu0 %399 }
  0xb7   : > { %v403_v17 = vsel %vm205_vm8, %v400_v15, %v402_v34  ;;  %v404_v36 = vsel %vm205_vm8, %v402_v34, %v400_v15 }
  0xb8   : > { %v405_v39 = vsel %vm148_vm9, %v404_v36, 0.0  ;;  %v408_v19 = vsub.f32 %v398_v33, %v403_v17 }
  0xb9   : > { %v407_v20 = vsub.f32 %v395_v18, %v405_v39  ;;  %v545_v21 = vpop.eup %544 }
  0xba   : > { %v410_v23 = vmul.f32 %v408_v19, %v408_v19  ;;  %v547_v24 = vpop.eup %546  ;;  %v326_v26 = vmul.f32 %v545_v21, %v317_v57 }
  0xbb   : > { %v409_v28 = vmul.f32 %v407_v20, %v407_v20  ;;  %v319_v29 = vmul.f32 %v547_v24, %v316_v61 }
  0xbc   : > { %v412_v31 = vadd.f32 %v410_v23, %v390_v22  ;;  %v328_v35 = vsel %vm327_vm15, %v317_v57, %v326_v26 }
  0xbd   : > { %v411_v25 = vadd.f32 %v409_v28, %v389_v27  ;;  %v321_v37 = vsel %vm320_vm1, %v316_v61, %v319_v29  ;;  %v331_v38 = vsel %vm329_vm0, %v330_v30, %v328_v35 }
  0xbe   : > { %v414_v40 = vadd.f32 1e-08, %v412_v31  ;;  %v324_v42 = vsel %vm322_vm2, %v323_v32, %v321_v37 }
  0xbf   : > { %v413_v43 = vadd.f32 1e-08, %v411_v25  ;;  %v334_v44 = vcombine.low %v324_v42, %v331_v38 }
  0xc0   : > { %548 = vrsqrt.f32 %v414_v40  ;;  %vm424_vm3 = vcmp.eq.f32.partialorder %v414_v40, inf  ;;  %v427_v51 = vand.u32 2147483648, %v414_v40  ;;  %vm426_vm5 = vcmp.eq.f32.partialorder %v414_v40, 0.0 }
  0xc1   : > { %550 = vrsqrt.f32 %v413_v43  ;;  %v341_v45 = vrot.slane %v334_v44, %v704_v41  ;;  %vm417_vm4 = vcmp.eq.f32.partialorder %v413_v43, inf  ;;  %v420_v52 = vand.u32 2147483648, %v413_v43 }
  0xc2   : > { %vm419_vm6 = vcmp.eq.f32.partialorder %v413_v43, 0.0 }
  0xc3   : > { %v348_v46 = vrot.slane %v341_v45, %v704_v41 }
  0xc5   : > { %518 = vst.msk [vmem:[%s717_s19 + $0x1] ss:$4 sm:$0x3] %vm720_vm14, %v348_v46 }
  0xca   : > { %v549_v47 = vpop.eup %548 }
  0xcb   : > { %v551_v48 = vpop.eup %550  ;;  %v423_v49 = vmul.f32 %v549_v47, %v414_v40 }
  0xcc   : > { %v416_v50 = vmul.f32 %v551_v48, %v413_v43 }
  0xcd   : > { %v425_v53 = vsel %vm424_vm3, %v414_v40, %v423_v49 }
  0xce   : > { %v418_v54 = vsel %vm417_vm4, %v413_v43, %v416_v50  ;;  %v428_v55 = vsel %vm426_vm5, %v427_v51, %v425_v53 }
  0xcf   : > { %v421_v1 = vsel %vm419_vm6, %v420_v52, %v418_v54 }
  0xd0   : > { %v431_v56 = vcombine.low %v421_v1, %v428_v55 }
  0xd2   : > { %v438_v57 = vrot.slane %v431_v56, %v704_v41 }
  0xd4   : > { %v445_v58 = vrot.slane %v438_v57, %v704_v41 }
  0xd6   : > { %522 = vst.msk [vmem:[%s717_s19 + $0x2] ss:$4 sm:$0x3] %vm720_vm14, %v445_v58 }
  0xd7 PF: > { %s11_s6 = sadd.s32 1, %s558_s6  }
  0xd8   : > { %p8_p4 = scmp.ge.s32.totalorder %s11_s6, 4  }
  0xda   :  { %10 = sbr.rel (!%p8_p4) target bundleno = 1 (0x1), region = 64 }

</bundles_post_ra>
